<compile_context>
chip_gen: v7x
topology: tpu7x:2x2x1
jax: 0.10.0
libtpu: 0.0.40
codegen_flags: <defaults>
</compile_context>

<pallas_src>
import jax
import jax.numpy as jnp
from jax import lax
from jax.experimental import pallas as pl
from jax.experimental.pallas import tpu as pltpu


EPS = 1e-5  # nn.GroupNorm default eps


def _prenorm_conv1x1_kernel(stats_ref, x_ref, w_ref, rs_ref, b_ref, o_ref):
    # stats_ref: (2*N,) f32 SMEM   -> [mean_0, rstd_0, mean_1, rstd_1, ...]
    # x_ref:     (C, T)            -> one spatial tile of one image (native dtype)
    # w_ref:     (C, C)            -> conv weights with GroupNorm gamma folded in
    # rs_ref:    (C, 1) f32        -> row-sums of the folded weights
    # b_ref:     (C, 1) f32        -> conv bias with GroupNorm beta folded in
    # o_ref:     (C, T)
    n = pl.program_id(0)
    mean = stats_ref[2 * n]
    rstd = stats_ref[2 * n + 1]

    # x goes to the MXU in its native / requested matmul dtype: the whole
    # normalization is folded into a post-matmul scalar scale + (C,1) bias.
    x = x_ref[...].astype(w_ref.dtype)                                  # no-op if same dtype
    acc = jnp.dot(w_ref[...], x, preferred_element_type=jnp.float32)    # (C, T) f32 on MXU

    bias = b_ref[...] - (mean * rstd) * rs_ref[...]                     # (C, 1), tiny VPU work
    o_ref[...] = (acc * rstd + bias).astype(o_ref.dtype)


def _choose_tile_and_budget(hw, c, x_itemsize, w_itemsize, n_images):
    """Pick the spatial tile T (multiple of 128, or full HW) and scoped-VMEM budget."""
    try:
        vmem_phys = int(pltpu.get_tpu_info().vmem_capacity_bytes)
    except Exception:
        vmem_phys = 64 * 1024 * 1024  # conservative (v7x per-TC) fallback

    if vmem_phys >= 128 * 1024 * 1024:      # v5e / v6e: 128 MiB physical, deeply mem-bound
        budget = 64 * 1024 * 1024
    else:                                   # v7x: 64 MiB per TensorCore -> stay under ~44 MiB
        budget = 44 * 1024 * 1024

    # T-independent residents: double-buffered weights, lane-padded bias/rowsum
    # vectors, plus ~2 MiB of compiler slack.
    resident = 2 * c * c * w_itemsize + 4 * c * 128 * 4 + (2 << 20)
    avail = max(budget - resident, 4 * 1024 * 1024)

    # Per spatial lane: double-buffered input + output tiles (x's real itemsize)
    # plus one f32 (C, T) matmul accumulator temporary inside the body.
    per_lane = c * (4 * x_itemsize + 4)
    t = min(4096, max(128, (avail // per_lane) // 128 * 128))

    if n_images == 1:
        # Keep >= 2 spatial tiles so the grid can span both TensorCores on a
        # v7x chip (harmless on single-TC v5e/v6e).
        t = min(t, max(128, (hw // 2) // 128 * 128))

    if hw <= t:
        return hw, budget

    # Prefer a tile that divides HW (full last tile -> unmasked stores), but
    # never shrink below half the budget-optimal tile.
    for cand in range(t, max(t // 2, 128) - 1, -128):
        if hw % cand == 0:
            return cand, budget
    return t, budget


def pre_normalization(x, gamma, beta, conv_w, conv_b, matmul_dtype=None):
    """GroupNorm(1, C) followed by fn = 1x1 Conv2d(C, C), fused in one kernel.

    x: (N, C, H, W). Returns (N, C, H, W) in x.dtype.
    """
    N, C, H, W = x.shape
    HW = H * W
    x3 = x.reshape(N, C, HW)

    if matmul_dtype is None:
        # Large C is MXU-bound: use the bf16 MXU path (v5e MXU is bf16-only;
        # bf16 is ~4x native f32 on v6e/v7x). Otherwise follow the input dtype.
        if x.dtype == jnp.float32 and C >= 512:
            matmul_dtype = jnp.bfloat16
        else:
            matmul_dtype = x.dtype

    # ---- one-time host-side folding: GroupNorm affine into the conv ----
    gamma_f = gamma.reshape(C).astype(jnp.float32)
    beta_f = beta.reshape(C).astype(jnp.float32)
    w_f = conv_w.reshape(C, C).astype(jnp.float32)          # (C_out, C_in)
    b_f = conv_b.reshape(C).astype(jnp.float32)

    w_fold = (w_f * gamma_f[None, :]).astype(matmul_dtype)              # (C, C)
    b_fold = (w_f @ beta_f + b_f).reshape(C, 1)                         # (C, 1) f32
    # Row-sums of the (quantized) folded weights; lets the kernel fold the
    # per-image mean into the output bias instead of normalizing every element.
    w_rowsum = jnp.sum(w_fold.astype(jnp.float32), axis=1, keepdims=True)  # (C, 1) f32

    # ---- per-image global statistics: single fused sum / sum-of-squares pass.
    # The f32 cast and square fuse into the reductions (no materialized copy).
    n_elem = C * HW
    xf32 = x3.astype(jnp.float32)
    s1 = jnp.sum(xf32, axis=(1, 2))                                      # (N,)
    s2 = jnp.sum(jnp.square(xf32), axis=(1, 2))                          # (N,)
    mean = s1 / n_elem
    var = jnp.maximum(s2 / n_elem - mean * mean, 0.0)                    # biased (PyTorch)
    rstd = lax.rsqrt(var + EPS)
    # Flat, interleaved (2*N,) f32 -> SMEM without 2-D lane padding.
    stats = jnp.stack([mean, rstd], axis=1).reshape(2 * N)

    # ---- tiling ----
    x_itemsize = jnp.dtype(x.dtype).itemsize
    w_itemsize = jnp.dtype(matmul_dtype).itemsize
    T, vmem_budget = _choose_tile_and_budget(HW, C, x_itemsize, w_itemsize, N)
    n_tiles = pl.cdiv(HW, T)

    cost = pl.CostEstimate(
        flops=2 * N * C * C * HW,
        transcendentals=0,
        bytes_accessed=2 * N * C * HW * x_itemsize + C * C * w_itemsize + 8 * C + 8 * N,
    )

    out = pl.pallas_call(
        _prenorm_conv1x1_kernel,
        out_shape=jax.ShapeDtypeStruct((N, C, HW), x.dtype),
        grid_spec=pltpu.PrefetchScalarGridSpec(
            num_scalar_prefetch=0,
            grid=(N, n_tiles),
            in_specs=[
                pl.BlockSpec(memory_space=pltpu.MemorySpace.SMEM),            # stats (2N,)
                pl.BlockSpec((pl.Squeezed(), C, T), lambda n, t: (n, 0, t)),  # x tile (C,T)
                pl.BlockSpec((C, C), lambda n, t: (0, 0)),                    # folded weights
                pl.BlockSpec((C, 1), lambda n, t: (0, 0)),                    # weight row-sums
                pl.BlockSpec((C, 1), lambda n, t: (0, 0)),                    # folded bias
            ],
            out_specs=pl.BlockSpec((pl.Squeezed(), C, T), lambda n, t: (n, 0, t)),
        ),
        compiler_params=pltpu.CompilerParams(
            dimension_semantics=("parallel", "parallel"),
            vmem_limit_bytes=vmem_budget,
        ),
        cost_estimate=cost,
    )(stats, x3, w_fold, w_rowsum, b_fold)

    return out.reshape(N, C, H, W)


def _reference(x, gamma, beta, conv_w, conv_b):
    # Pure-JAX reference: GroupNorm(1, C) then 1x1 conv.
    N, C, H, W = x.shape
    xf = x.reshape(N, -1).astype(jnp.float32)
    mean = xf.mean(axis=1, keepdims=True)
    var = ((xf - mean) ** 2).mean(axis=1, keepdims=True)
    xn = ((xf - mean) / jnp.sqrt(var + EPS)).reshape(N, C, H, W)
    xn = xn * gamma.reshape(1, C, 1, 1) + beta.reshape(1, C, 1, 1)
    y = jnp.einsum("oc,nchw->nohw", conv_w.reshape(C, C), xn)
    return y + conv_b.reshape(1, C, 1, 1)


if __name__ == "__main__":
    key = jax.random.PRNGKey(0)
    k_x, k_g, k_b, k_w, k_cb = jax.random.split(key, 5)

    N, C, H, W = 2, 4, 16, 16
    x = jax.random.normal(k_x, (N, C, H, W), dtype=jnp.float32)

    # GroupNorm affine params (perturbed so the folded-affine path is exercised).
    gamma = 1.0 + 0.1 * jax.random.normal(k_g, (C,), dtype=jnp.float32)
    beta = 0.1 * jax.random.normal(k_b, (C,), dtype=jnp.float32)

    # fn = Conv2d(C, C, kernel_size=1) parameters, deterministic init.
    conv_w = 0.2 * jax.random.normal(k_w, (C, C, 1, 1), dtype=jnp.float32)
    conv_b = 0.05 * jax.random.normal(k_cb, (C,), dtype=jnp.float32)

    out = pre_normalization(x, gamma, beta, conv_w, conv_b)
    out = jax.block_until_ready(out)

    ref = _reference(x, gamma, beta, conv_w, conv_b)
    assert out.shape == (N, C, H, W)
    assert jnp.allclose(out, ref, atol=1e-4, rtol=1e-4), "mismatch vs reference"

    print("KERNEL_OK")
</pallas_src>

<mosaic_0001>
module attributes {stable_mosaic.version = 11 : i64} {
  func.func @_prenorm_conv1x1_kernel(%arg0: i32, %arg1: i32, %arg2: memref<4xf32, #tpu.memory_space<smem>>, %arg3: memref<1x4x256xf32, #tpu.memory_space<vmem>>, %arg4: memref<4x4xf32, #tpu.memory_space<vmem>>, %arg5: memref<4x1xf32, #tpu.memory_space<vmem>>, %arg6: memref<4x1xf32, #tpu.memory_space<vmem>>, %arg7: memref<1x4x256xf32, #tpu.memory_space<vmem>>) attributes {dimension_semantics = [#tpu.dimension_semantics<parallel>, #tpu.dimension_semantics<parallel>], iteration_bounds = array<i64: 2, 1>, scalar_prefetch = 0 : i64, scratch_operands = 0 : i64, tpu.core_type = #tpu.core_type<tc>, window_params = [{transform_indices = @transform_0, window_bounds = array<i64: 4>}, {transform_indices = @transform_1, window_bounds = array<i64: 1, 4, 256>}, {pipeline_mode = #tpu.pipeline_mode<synchronous>, transform_indices = @transform_2, window_bounds = array<i64: 4, 4>}, {pipeline_mode = #tpu.pipeline_mode<synchronous>, transform_indices = @transform_3, window_bounds = array<i64: 4, 1>}, {pipeline_mode = #tpu.pipeline_mode<synchronous>, transform_indices = @transform_4, window_bounds = array<i64: 4, 1>}, {transform_indices = @transform_5, window_bounds = array<i64: 1, 4, 256>}]} {
    %c2_i32 = arith.constant 2 : i32
    %0 = arith.muli %c2_i32, %arg0 : i32
    %1 = arith.index_cast %0 : i32 to index
    %2 = memref.load %arg2[%1] : memref<4xf32, #tpu.memory_space<smem>>
    %c2_i32_0 = arith.constant 2 : i32
    %3 = arith.muli %c2_i32_0, %arg0 : i32
    %c1_i32 = arith.constant 1 : i32
    %4 = arith.addi %3, %c1_i32 : i32
    %5 = arith.index_cast %4 : i32 to index
    %6 = memref.load %arg2[%5] : memref<4xf32, #tpu.memory_space<smem>>
    %c0 = arith.constant 0 : index
    %c0_1 = arith.constant 0 : index
    %c0_2 = arith.constant 0 : index
    %7 = vector.load %arg3[%c0, %c0_1, %c0_2] : memref<1x4x256xf32, #tpu.memory_space<vmem>>, vector<1x4x256xf32>
    %8 = vector.shape_cast %7 : vector<1x4x256xf32> to vector<4x256xf32>
    %c0_3 = arith.constant 0 : index
    %c0_4 = arith.constant 0 : index
    %9 = vector.load %arg4[%c0_3, %c0_4] : memref<4x4xf32, #tpu.memory_space<vmem>>, vector<4x4xf32>
    %cst = arith.constant dense<0.000000e+00> : vector<4x256xf32>
    %10 = tpu.matmul %9, %8, %cst {dimension_numbers = #tpu.dot_dimension_numbers<[1], [0], [0], [1], [0, 0, 1, 1], [], []>} : vector<4x4xf32>, vector<4x256xf32>, vector<4x256xf32> -> vector<4x256xf32>
    %c0_5 = arith.constant 0 : index
    %c0_6 = arith.constant 0 : index
    %11 = vector.load %arg6[%c0_5, %c0_6] : memref<4x1xf32, #tpu.memory_space<vmem>>, vector<4x1xf32>
    %12 = arith.mulf %2, %6 : f32
    %c0_7 = arith.constant 0 : index
    %c0_8 = arith.constant 0 : index
    %13 = vector.load %arg5[%c0_7, %c0_8] : memref<4x1xf32, #tpu.memory_space<vmem>>, vector<4x1xf32>
    %14 = vector.broadcast %12 : f32 to vector<4x1xf32>
    %15 = arith.mulf %14, %13 : vector<4x1xf32>
    %16 = arith.subf %11, %15 : vector<4x1xf32>
    %17 = vector.broadcast %6 : f32 to vector<4x256xf32>
    %18 = arith.mulf %10, %17 : vector<4x256xf32>
    %19 = vector.broadcast %16 : vector<4x1xf32> to vector<4x256xf32>
    %20 = arith.addf %18, %19 : vector<4x256xf32>
    %c0_9 = arith.constant 0 : index
    %c0_10 = arith.constant 0 : index
    %c0_11 = arith.constant 0 : index
    %21 = vector.load %arg7[%c0_9, %c0_10, %c0_11] : memref<1x4x256xf32, #tpu.memory_space<vmem>>, vector<1x4x256xf32>
    %22 = vector.shape_cast %21 : vector<1x4x256xf32> to vector<4x256xf32>
    %23 = vector.shape_cast %20 : vector<4x256xf32> to vector<1x4x256xf32>
    tpu.vector_store %arg7[%c0_9, %c0_10, %c0_11], %23 {strides = array<i32>} : memref<1x4x256xf32, #tpu.memory_space<vmem>>, vector<1x4x256xf32>,
    return
  }
  func.func @transform_0(%arg0: i32, %arg1: i32) -> i32 {
    %c0_i32 = arith.constant 0 : i32
    %c0_i32_0 = arith.constant 0 : i32
    return %c0_i32 : i32
  }
  func.func @transform_1(%arg0: i32, %arg1: i32) -> (i32, i32, i32) {
    %c0_i32 = arith.constant 0 : i32
    %c0_i32_0 = arith.constant 0 : i32
    return %arg0, %c0_i32, %arg1 : i32, i32, i32
  }
  func.func @transform_2(%arg0: i32, %arg1: i32) -> (i32, i32) {
    %c0_i32 = arith.constant 0 : i32
    %c0_i32_0 = arith.constant 0 : i32
    %c0_i32_1 = arith.constant 0 : i32
    return %c0_i32, %c0_i32_0 : i32, i32
  }
  func.func @transform_3(%arg0: i32, %arg1: i32) -> (i32, i32) {
    %c0_i32 = arith.constant 0 : i32
    %c0_i32_0 = arith.constant 0 : i32
    %c0_i32_1 = arith.constant 0 : i32
    return %c0_i32, %c0_i32_0 : i32, i32
  }
  func.func @transform_4(%arg0: i32, %arg1: i32) -> (i32, i32) {
    %c0_i32 = arith.constant 0 : i32
    %c0_i32_0 = arith.constant 0 : i32
    %c0_i32_1 = arith.constant 0 : i32
    return %c0_i32, %c0_i32_0 : i32, i32
  }
  func.func @transform_5(%arg0: i32, %arg1: i32) -> (i32, i32, i32) {
    %c0_i32 = arith.constant 0 : i32
    %c0_i32_0 = arith.constant 0 : i32
    return %arg0, %c0_i32, %arg1 : i32, i32, i32
  }
}

</mosaic_0001>

<bundles_post_ra>
// kernel: tpu_custom_call.1
= control target key start
LH: loop header
LB: loop body
LE: loop exit
PB: predicated region body
PF: predicated region fallthrough
CT: control target
= control target key end

     0   :  { %10 = vsyncpa [#allocation5], 0  ;;  %s978_s0 = inlined_call_operand.vmem [shape: f32[4], index: 0, kind: input, shape index: {}]   ;;  %s979_s1 = inlined_call_operand.hbm [shape: f32[2,4,256], index: 1, kind: input, shape index: {}]   ;;  %s980_s2 = inlined_call_operand.vmem [shape: f32[4,4], index: 2, kind: input, shape index: {}]   ;;  %s981_s3 = inlined_call_operand.vmem [shape: f32[4,1], index: 3, kind: input, shape index: {}]   ;;  %s982_s4 = inlined_call_operand.vmem [shape: f32[4,1], index: 4, kind: input, shape index: {}]   ;;  %s983_s5 = inlined_call_operand.hbm [shape: f32[2,4,256], index: 5, kind: output, shape index: {}]  }
   0x1   :  { %11 = vsyncpa [#allocation3], 0 }
   0x2   :  { %13 = vsyncpa [#allocation3 + $0x1], 0 }
   0x3   :  { %14 = vsyncpa [#allocation4], 0 }
   0x4   :  { %16 = vsyncpa [#allocation4 + $0x1], 0  ;;  %s765_s18 = smov 0   ;;  %s767_s19 = smov 0  }
   0x5   :  { %s769_s20 = smov 0   ;;  %s771_s21 = smov 0  }
   0x6   :  { %s773_s22 = smov 0   ;;  %s775_s23 = smov 0  }
   0x7 LB: > { %s497_s24 = sadd.s32 4294967295, %s728_s23   ;;  %s498_s25 = sadd.s32 4294967294, %s728_s23   ;;  %s728_s23 = sphi %s775_s23, %s22_s23   ;;  %s724_s22 = sphi %s773_s22, %s1005_s22   ;;  %s720_s21 = sphi %s771_s21, %s1004_s21   ;;  %s716_s20 = sphi %s769_s20, %s1003_s20   ;;  %s712_s19 = sphi %s767_s19, %s1002_s19   ;;  %s708_s18 = sphi %s765_s18, %s1001_s18  }
   0x8   : > { %p77_p0 = scmp.ne.s32.totalorder %s712_s19, %s708_s18  ;;  %p799_p1 = scmp.eq.s32.totalorder %s497_s24, 0 }
   0x9   : > { %p803_p2 = scmp.eq.s32.totalorder %s497_s24, 1  ;;  %p172_p3 = scmp.eq.s32.totalorder %s498_s25, 1 }
   0xa   : > { %s988_s26 = scalar_select %p799_p1, 1, 0 }
   0xb   : > { %p809_p4 = por %p799_p1, %p77_p0  ;;  %p499_p5 = scmp.ge.s32.totalorder %s728_s23, 1 }
   0xc   : > { %p814_p6 = por %p172_p3, %p77_p0  ;;  %p179_p7 = scmp.lt.s32.totalorder %s728_s23, 3 }
   0xd   : > { %s990_s28 = scalar_select %p809_p4, 1, 0 }
   0xe   : > { %s991_s29 = scalar_select %p814_p6, 1, 0 }
   0xf   : > { %s192_s7 = sshll.u32 %s978_s0, 4  ;;  %p822_p8 = pnand %p499_p5, %p179_p7  ;;  %s193_s7 = int_to_ptr.vmem [resolvable:$true] %s192_s7 }
  0x10   : > { %s34_s10 = sadd.s32 1, %s724_s22  ;;  %s64_s11 = sadd.s32 1, %s716_s20 }
  0x11   : > { %p528_p10 = pneg %p822_p8  ;;  %p36_p12 = scmp.ge.s32.totalorder %s34_s10, 2 }
  0x12   : > { %s597_s12 = scalar_lea.vmem %s193_s7, 16  ;;  %p605_p7 = scmp.lt.s32.totalorder %s193_s7, %s193_s7 }
  0x13   : > { %p831_p11 = pnand %p528_p10, %p799_p1  ;;  %p598_p13 = scmp.ne.s32.totalorder %s193_s7, %s597_s12 }
  0x14   : > { %p606_p6 = scmp.lt.s32.totalorder %s597_s12, %s597_s12 }
  0x15   : > { %p599_p0 = pneg %p831_p11 }
  0x16   : > { %p607_p9 = por %p606_p6, %p605_p7 }
  0x17   : > { %p600_p3 = pnand %p599_p0, %p598_p13 }
  0x19   : > { %p601_p5 = pneg %p600_p3 }
  0x1b   : > { %p608_p4 = pnand %p607_p9, %p601_p5 }
  0x1d   : > { %611 = shalt.err (!%p608_p4)
}
  0x1e   : > { %s730_s13 = smov [#allocation2]   ;;  %s1007_s10 = smov (%p36_p12, %s34_s10), 0 }
  0x1f   : > { %531 = dma.vmem_to_smem (!%p831_p11), %s193_s7, 16, %s730_s13, [#allocation5]  }
  0x20   : > { %p71_p10 = scmp.ne.s32.totalorder %s716_s20, %s712_s19  ;;  %p72_p6 = scmp.eq.s32.totalorder %s728_s23, 0 }
  0x21   : > { %s59_s14 = ssub.s32 %s724_s22, %s1007_s10  ;;  %p541_p4 = scmp.lt.s32.totalorder %s728_s23, 2 }
  0x22   : > { %p62_p9 = scmp.eq.s32.totalorder %s59_s14, 0  ;;  %p73_p13 = por %p72_p6, %p71_p10 }
  0x23   : > { %p851_p0 = por %p803_p2, %p71_p10  ;;  %s212_s16 = sand.u32 1, %s716_s20  }
  0x24   : > { %s857_s17 = scalar_select %p62_p9, %s716_s20, %s64_s11  }
  0x25   : > { %s994_s15 = scalar_select %p851_p0, 1, 0 }
  0x26   : > { %s502_s24 = sshll.u32 %s212_s16, 3  ;;  %s518_s25 = sshll.u32 %s724_s22, 7 }
  0x27   : > { %s863_s7 = scalar_lea.hbm %s979_s1, %s518_s25  ;;  %s216_s9 = scalar_lea.vmem [#allocation6], %s502_s24 }
  0x28   : > { %s226_s27 = sshll.u32 %s216_s9, 4  ;;  %p867_p2 = pnand %p541_p4, %p73_p13  ;;  %s865_s27 = int_to_ptr.vmem [resolvable:$true] %s226_s27 }
  0x29   : > { %s213_s11 = scalar_lea.sflag [#allocation3], %s212_s16  ;;  %s612_s13 = scalar_lea.hbm %s863_s7, 128 }
  0x2a   : > { %p613_p11 = scmp.ne.s32.totalorder %s863_s7, %s612_s13  ;;  %p614_p12 = pneg %p867_p2 }
  0x2b   : > { %s617_s25 = scalar_lea.hbm %s979_s1, 256  ;;  %p618_p7 = scmp.lt.u32.totalorder %s863_s7, %s979_s1 }
  0x2c   : > { %p615_p3 = pnand %p614_p12, %p613_p11  ;;  %p619_p10 = scmp.lt.u32.totalorder %s617_s25, %s612_s13 }
  0x2d   : > { %p621_p4 = scmp.lt.u32.totalorder %s612_s13, %s863_s7 }
  0x2e   : > { %p616_p5 = pneg %p615_p3  ;;  %p620_p6 = por %p619_p10, %p618_p7 }
  0x30   : > { %p622_p9 = por %p621_p4, %p620_p6 }
  0x32   : > { %p623_p13 = pnand %p622_p9, %p616_p5 }
  0x34   : > { %626 = shalt.err (!%p623_p13)
}
  0x35   : > { %s627_s16 = scalar_lea.vmem %s865_s27, 128  ;;  %s731_s9 = smov [#allocation6]  }
  0x36   : > { %p628_p11 = scmp.ne.s32.totalorder %s865_s27, %s627_s16  ;;  %s632_s14 = sshll.u32 %s731_s9, 4  ;;  %s633_s14 = int_to_ptr.vmem [resolvable:$false] %s632_s14 }
  0x37   : > { %s634_s24 = scalar_lea.vmem %s633_s14, 256  ;;  %p635_p1 = scmp.lt.s32.totalorder %s865_s27, %s633_s14 }
  0x38   : > { %p630_p3 = pnand %p628_p11, %p614_p12  ;;  %p636_p7 = scmp.lt.s32.totalorder %s634_s24, %s627_s16 }
  0x3a   : > { %p631_p0 = pneg %p630_p3  ;;  %p637_p10 = por %p636_p7, %p635_p1 }
  0x3c   : > { %p638_p6 = pnand %p637_p10, %p631_p0 }
  0x3e   : > { %641 = shalt.err (!%p638_p6)
}
  0x3f   : > { %535 = dma.hbm_to_vmem [thread:$0]  (!%p867_p2), %s863_s7, 128, %s865_s27, %s213_s11  }
  0x40   : > { %235 = sbr.rel (%p822_p8) target bundleno = 316 (0x13c), region = 40  ;;  %p996_p12 = scmp.ne.s32.totalorder (!%p822_p8), %s988_s26, 0 }
  0x47   : > { %695 = dma.done.wait (%p996_p12), [#allocation5], 16  }
  0x48   : > { %697 = vsyncadd (%p996_p12), [#allocation5], 4294967280  ;;  %s903_s13 = sand.u32 1, %s712_s19   ;;  %p997_p1 = scmp.ne.s32.totalorder %s990_s28, 0 }
  0x49   : > { %s507_s12 = sshll.u32 %s903_s13, 3  ;;  %s242_s25 = scalar_lea.sflag [#allocation3], %s903_s13 }
  0x4a   : > { %s245_s7 = scalar_lea.vmem [#allocation6], %s507_s12 }
  0x4b   : > { %699 = dma.done.wait (%p997_p1), %s242_s25, 128  }
  0x4c   : > { %701 = vsyncadd (%p997_p1), %s242_s25, 4294967168 }
  0x4d   : > { %250 = sfence }
  0x4e   : > { %v279_v0 = vld [vmem:[%s245_s7] sm:$0xff]  ;;  %vm287_vm0 = vcmask 1043456   ;;  %v732_v2 = vmov 0.0   ;;  %s509_s26 = sshll.u32 %s720_s21, 1  ;;  %vm283_vm1 = vcmask 31744   ;;  %v733_v4 = vmov 0  }
  0x4f   : > { %v282_v1 = vcombine.high %v279_v0, %v279_v0  ;;  %356 = vmatprep.mubr.f32.mxu0 %v732_v2  ;;  %v280_v3 = vld [vmem:[%s980_s2] sm:$0xf]  ;;  %595 = vset.pattern.permute.xlu0 %v733_v4  ;;  %s276_s11 = sld [smem:[#allocation2 + %s509_s26]]  ;;  %s277_s30 = sadd.s32 1, %s509_s26 }
  0x50   : > { %s278_s28 = sld [smem:[#allocation2 + %s277_s30]]  ;;  %v365_v5 = vld [vmem:[%s981_s3] sm:$0xf]  ;;  %s519_s25 = sshll.u32 %s720_s21, 7 }
  0x51   : > { %510 = vmatprep.subr.msk.mxu0 %vm287_vm0, %v282_v1  ;;  %v363_v6 = vld [vmem:[%s982_s4] sm:$0xf]  ;;  %s272_s7 = scalar_lea.vmem [#allocation7], %s507_s12  ;;  %s385_s30 = scalar_lea.sflag [#allocation4], %s903_s13 }
  0x52   : > { %511 = vmatpush1.msk.msra.mxu0 %vm287_vm0, %v279_v0  ;;  %s401_s26 = sshll.u32 %s272_s7, 4  ;;  %p998_p0 = scmp.ne.s32.totalorder %s994_s15, 0  ;;  %s931_s26 = int_to_ptr.vmem [resolvable:$true] %s401_s26 }
  0x53   : > { %512 = vmatmul.mubr.msk.f32.vlgmr.msra.gmra.mrb[0].mxu0 %vm283_vm1, %v280_v3  ;;  %s734_s21 = smov [#allocation7]  }
  0x54   : > { %s646_s12 = sshll.u32 %s734_s21, 4  ;;  %s647_s12 = int_to_ptr.vmem [resolvable:$false] %s646_s12 }
  0x55   : > { %p649_p4 = scmp.lt.s32.totalorder %s931_s26, %s647_s12 }
  0x56   : > { %s364_s6 = smul.f32 %s278_s28, %s276_s11  ;;  %v369_v10 = vstv %s278_s28  ;;  %s929_s11 = scalar_lea.hbm %s983_s5, %s519_s25 }
  0x57   : > { %s642_s28 = scalar_lea.vmem %s931_s26, 128 }
  0x58   : > { %v366_v7 = vstv %s364_s6  ;;  %p643_p8 = scmp.ne.s32.totalorder %s931_s26, %s642_s28  ;;  %s648_s6 = scalar_lea.vmem %s647_s12, 256 }
  0x59   : > { %v367_v8 = vmul.f32 %v366_v7, %v365_v5  ;;  %p650_p9 = scmp.lt.s32.totalorder %s648_s6, %s642_s28 }
  0x5a   : > { %p644_p2 = pnand %p643_p8, %p998_p0 }
  0x5b   : > { %v368_v9 = vsub.f32 %v363_v6, %v367_v8  ;;  %p651_p13 = por %p650_p9, %p649_p4 }
  0x5c   : > { %p645_p5 = pneg %p644_p2 }
  0x5d   : > { %374 = vperm.xlu0 %595, %v368_v9  }
  0x5e   : > { %p652_p11 = pnand %p651_p13, %p645_p5 }
  0xdc   : > { %v375_v12 = vpop.permute.xlu0 %374 }
 0x126   : > { %v358_v11 = vpop.f32.mrb[0].mxu0 }
 0x127   : > { %v370_v13 = vmul.f32 %v369_v10, %v358_v11  ;;  %v360_v14 = vpop.f32.mrb[1].mxu0 }
 0x128   : > { %v371_v15 = vmul.f32 %v369_v10, %v360_v14 }
 0x129   : > { %v377_v16 = vadd.f32 %v375_v12, %v370_v13 }
 0x12a   : > { %v378_v17 = vadd.f32 %v375_v12, %v371_v15 }
 0x12c   : > { %v381_v18 = vcombine.low %v377_v16, %v378_v17 }
 0x12e   : > { %383 = vst [vmem:[%s272_s7] sm:$0xff] %v381_v18 }
 0x12f   : > { %655 = shalt.err (!%p652_p11)
}
 0x130   : > { %s656_s13 = scalar_lea.hbm %s929_s11, 128  ;;  %s660_s14 = scalar_lea.hbm %s983_s5, 256 }
 0x131   : > { %p657_p3 = scmp.ne.s32.totalorder %s929_s11, %s656_s13  ;;  %p661_p6 = scmp.lt.u32.totalorder %s929_s11, %s983_s5 }
 0x132   : > { %p662_p12 = scmp.lt.u32.totalorder %s660_s14, %s656_s13  ;;  %p664_p8 = scmp.lt.u32.totalorder %s656_s13, %s929_s11 }
 0x133   : > { %p658_p7 = pnand %p657_p3, %p998_p0 }
 0x134   : > { %p663_p1 = por %p662_p12, %p661_p6 }
 0x135   : > { %p659_p10 = pneg %p658_p7 }
 0x136   : > { %p665_p2 = por %p664_p8, %p663_p1 }
 0x138   : > { %p666_p5 = pnand %p665_p2, %p659_p10 }
 0x13a   : > { %669 = shalt.err (!%p666_p5)
}
 0x13b   : > { %526 = dma.vmem_to_hbm [thread:$0]  (%p998_p0), %s931_s26, 128, %s929_s11, %s385_s30  }
 0x13c PF: > { %s413_s7 = sand.u32 1, %s708_s18   ;;  %p999_p4 = scmp.ne.s32.totalorder %s991_s29, 0 }
 0x13d   : > { %p1000_p9 = scmp.ge.s32.totalorder %s728_s23, 2  ;;  %s414_s8 = scalar_lea.sflag [#allocation4], %s413_s7 }
 0x13f   : > { %p537_p13 = pnand %p1000_p9, %p999_p4 }
 0x141   : > { %703 = dma.done.wait (!%p537_p13), %s414_s8, 128  }
 0x142   : > { %705 = vsyncadd (!%p537_p13), %s414_s8, 4294967168  ;;  %s22_s23 = sadd.s32 1, %s728_s23   ;;  %s1001_s18 = smov %s712_s19 }
 0x143   : > { %p19_p11 = scmp.ge.s32.totalorder %s22_s23, 4   ;;  %s1002_s19 = smov %s716_s20 }
 0x144   : > { %s1003_s20 = smov %s857_s17  ;;  %s1004_s21 = smov %s724_s22 }
 0x145   : > { %s1005_s22 = smov %s1007_s10  ;;  %21 = sbr.rel (!%p19_p11) target bundleno = 7 (0x7), region = 90 }
 0x14c   :  { %419 = vsyncpa [#allocation3], 1 }
 0x14d   :  { %421 = vsyncpa [#allocation3 + $0x1], 1 }
 0x14e   :  { %422 = vsyncpa [#allocation4], 1 }
 0x14f   :  { %424 = vsyncpa [#allocation4 + $0x1], 1 }
 0x150   :  { %425 = vsyncpa [#allocation5], 1 }
 0x151   :  { %427 = vsyncpa [#allocation5 + $0x1], 1 }

</bundles_post_ra>
